<compile_context>
chip_gen: v5e
topology: v5e:2x2
jax: 0.10.0
libtpu: 0.0.40
codegen_flags: <defaults>
</compile_context>

<pallas_src>
import functools

import jax
import jax.numpy as jnp
from jax.experimental import pallas as pl
from jax.experimental.pallas import tpu as pltpu


def _decoder_kernel(probs_ref, p_ref, out_ref):
    # probs_ref: (1, B, max_k)   p_ref: (1, max_k, TM)   out_ref: (1, B, TM)
    acc = jnp.dot(probs_ref[0], p_ref[0], preferred_element_type=jnp.float32)
    # torch.clamp_(output, 0, 1)
    out_ref[0] = jnp.clip(acc, 0.0, 1.0).astype(out_ref.dtype)


@functools.partial(jax.jit, static_argnames=("tm_cap",))
def _decode_all(probs_stack, p_stack, tm_cap=8192):
    """probs_stack: (G, B, max_k), p_stack: (G, max_k, M) -> (G, B, M) in [0, 1]."""
    G, B, max_k = probs_stack.shape
    _, _, M = p_stack.shape

    # Single tile over M if it fits the cap; otherwise a 128-aligned large tile.
    if M <= tm_cap:
        tm = M
    else:
        tm = max(128, (tm_cap // 128) * 128)

    grid = (G, pl.cdiv(M, tm))
    itemsize = jnp.dtype(probs_stack.dtype).itemsize
    cost = pl.CostEstimate(
        flops=2 * G * B * max_k * M,
        transcendentals=0,
        bytes_accessed=(G * max_k * M + G * B * M + G * B * max_k) * itemsize,
    )

    return pl.pallas_call(
        _decoder_kernel,
        out_shape=jax.ShapeDtypeStruct((G, B, M), probs_stack.dtype),
        grid_spec=pltpu.PrefetchScalarGridSpec(
            num_scalar_prefetch=0,
            grid=grid,
            in_specs=[
                # probs for group g: tiny, resident across M tiles.
                pl.BlockSpec((1, B, max_k), lambda g, j: (g, 0, 0)),
                # P slice for group g, streamed along M in large tiles.
                pl.BlockSpec((1, max_k, tm), lambda g, j: (g, 0, j)),
            ],
            out_specs=pl.BlockSpec((1, B, tm), lambda g, j: (g, 0, j)),
        ),
        compiler_params=pltpu.CompilerParams(
            dimension_semantics=("parallel", "parallel"),
        ),
        cost_estimate=cost,
    )(probs_stack, p_stack)


class NeuralDecoderPallas:
    """JAX/Pallas equivalent of NeuralDecoder.

    Args:
        output_size: number of markers M.
        inits: initial P matrix of shape (sum(ks), M)  (as actually used by the
               PyTorch code: weight_k = inits[ini:end].T with weight shape (M, k)).
        ks: list of K values.
    """

    def __init__(self, output_size, inits, ks):
        self.output_size = output_size
        self.ks = sorted(ks)
        self.min_k_val = min(self.ks)
        self.max_k = max(self.ks)

        inits = jnp.asarray(inits, dtype=jnp.float32)
        slices = []
        ini = 0
        for k in self.ks:
            end = ini + k
            s = inits[ini:end]  # (k, M); Linear(probs) == probs @ s
            if k < self.max_k:
                s = jnp.pad(s, ((0, self.max_k - k), (0, 0)))  # zero rows -> exact
            slices.append(s)
            ini = end
        # (G, max_k, M) — all decoders stacked for one fused kernel launch.
        self.p_stack = jnp.stack(slices, axis=0)

    def __call__(self, probs):
        padded = []
        for i, k in enumerate(self.ks):
            p = jnp.asarray(probs[i], dtype=jnp.float32)
            if k < self.max_k:
                p = jnp.pad(p, ((0, 0), (0, self.max_k - k)))  # zero cols -> exact
            padded.append(p)
        probs_stack = jnp.stack(padded, axis=0)  # (G, B, max_k)
        out = _decode_all(probs_stack, self.p_stack)  # (G, B, M)
        return [out[i] for i in range(len(self.ks))]


if __name__ == "__main__":
    key = jax.random.PRNGKey(0)

    ks = [3, 4, 5]
    B = 2  # batch size

    def make_inputs(key, M):
        k_inits, k_probs = jax.random.split(key)
        inits = jax.random.uniform(k_inits, (sum(ks), M), dtype=jnp.float32)
        probs = []
        pk = k_probs
        for k in ks:
            pk, sub = jax.random.split(pk)
            logits = jax.random.normal(sub, (B, k), dtype=jnp.float32)
            probs.append(jax.nn.softmax(logits, axis=-1))
        return inits, probs

    # --- Main test: M = 256 (single M tile) ---
    M = 256
    inits, probs = make_inputs(key, M)
    decoder = NeuralDecoderPallas(M, inits, ks)
    outs = decoder(probs)
    outs = [jax.block_until_ready(o) for o in outs]

    ini = 0
    for i, k in enumerate(sorted(ks)):
        ref = jnp.clip(probs[i] @ inits[ini:ini + k], 0.0, 1.0)
        ini += k
        assert outs[i].shape == (B, M)
        assert jnp.allclose(outs[i], ref, atol=1e-5, rtol=1e-5)

    # --- Secondary test: non-multiple-of-128 M with a small tile cap to
    #     exercise the tiled / partial-last-block path. ---
    M2 = 320
    inits2, probs2 = make_inputs(jax.random.PRNGKey(1), M2)
    decoder2 = NeuralDecoderPallas(M2, inits2, ks)
    padded2 = []
    for i, k in enumerate(sorted(ks)):
        p = probs2[i]
        if k < decoder2.max_k:
            p = jnp.pad(p, ((0, 0), (0, decoder2.max_k - k)))
        padded2.append(p)
    out2 = jax.block_until_ready(
        _decode_all(jnp.stack(padded2, axis=0), decoder2.p_stack, tm_cap=128)
    )
    ini = 0
    for i, k in enumerate(sorted(ks)):
        ref = jnp.clip(probs2[i] @ inits2[ini:ini + k], 0.0, 1.0)
        ini += k
        assert jnp.allclose(out2[i], ref, atol=1e-5, rtol=1e-5)

    print("KERNEL_OK")
</pallas_src>

<mosaic_0001>
module attributes {stable_mosaic.version = 11 : i64} {
  func.func @_decoder_kernel(%arg0: i32, %arg1: i32, %arg2: memref<1x2x5xf32, #tpu.memory_space<vmem>>, %arg3: memref<1x5x256xf32, #tpu.memory_space<vmem>>, %arg4: memref<1x2x256xf32, #tpu.memory_space<vmem>>) attributes {dimension_semantics = [#tpu.dimension_semantics<parallel>, #tpu.dimension_semantics<parallel>], iteration_bounds = array<i64: 3, 1>, scalar_prefetch = 0 : i64, scratch_operands = 0 : i64, tpu.core_type = #tpu.core_type<tc>, window_params = [{transform_indices = @transform_0, window_bounds = array<i64: 1, 2, 5>}, {transform_indices = @transform_1, window_bounds = array<i64: 1, 5, 256>}, {transform_indices = @transform_2, window_bounds = array<i64: 1, 2, 256>}]} {
    %c0 = arith.constant 0 : index
    %c0_0 = arith.constant 0 : index
    %c0_1 = arith.constant 0 : index
    %0 = vector.load %arg2[%c0, %c0_0, %c0_1] : memref<1x2x5xf32, #tpu.memory_space<vmem>>, vector<1x2x5xf32>
    %1 = vector.shape_cast %0 : vector<1x2x5xf32> to vector<2x5xf32>
    %c0_2 = arith.constant 0 : index
    %c0_3 = arith.constant 0 : index
    %c0_4 = arith.constant 0 : index
    %2 = vector.load %arg3[%c0_2, %c0_3, %c0_4] : memref<1x5x256xf32, #tpu.memory_space<vmem>>, vector<1x5x256xf32>
    %3 = vector.shape_cast %2 : vector<1x5x256xf32> to vector<5x256xf32>
    %cst = arith.constant dense<0.000000e+00> : vector<2x256xf32>
    %4 = tpu.matmul %1, %3, %cst {dimension_numbers = #tpu.dot_dimension_numbers<[1], [0], [0], [1], [0, 0, 1, 1], [], []>} : vector<2x5xf32>, vector<5x256xf32>, vector<2x256xf32> -> vector<2x256xf32>
    %cst_5 = arith.constant 0.000000e+00 : f32
    %cst_6 = arith.constant 1.000000e+00 : f32
    %5 = vector.broadcast %cst_5 : f32 to vector<2x256xf32>
    %6 = arith.maximumf %5, %4 : vector<2x256xf32>
    %7 = vector.broadcast %cst_6 : f32 to vector<2x256xf32>
    %8 = arith.minimumf %7, %6 : vector<2x256xf32>
    %c0_7 = arith.constant 0 : index
    %c0_8 = arith.constant 0 : index
    %c0_9 = arith.constant 0 : index
    %9 = vector.load %arg4[%c0_7, %c0_8, %c0_9] : memref<1x2x256xf32, #tpu.memory_space<vmem>>, vector<1x2x256xf32>
    %10 = vector.shape_cast %9 : vector<1x2x256xf32> to vector<2x256xf32>
    %11 = vector.shape_cast %8 : vector<2x256xf32> to vector<1x2x256xf32>
    tpu.vector_store %arg4[%c0_7, %c0_8, %c0_9], %11 {strides = array<i32>} : memref<1x2x256xf32, #tpu.memory_space<vmem>>, vector<1x2x256xf32>,
    return
  }
  func.func @transform_0(%arg0: i32, %arg1: i32) -> (i32, i32, i32) {
    %c0_i32 = arith.constant 0 : i32
    %c0_i32_0 = arith.constant 0 : i32
    %c0_i32_1 = arith.constant 0 : i32
    return %arg0, %c0_i32, %c0_i32_0 : i32, i32, i32
  }
  func.func @transform_1(%arg0: i32, %arg1: i32) -> (i32, i32, i32) {
    %c0_i32 = arith.constant 0 : i32
    %c0_i32_0 = arith.constant 0 : i32
    return %arg0, %c0_i32, %arg1 : i32, i32, i32
  }
  func.func @transform_2(%arg0: i32, %arg1: i32) -> (i32, i32, i32) {
    %c0_i32 = arith.constant 0 : i32
    %c0_i32_0 = arith.constant 0 : i32
    return %arg0, %c0_i32, %arg1 : i32, i32, i32
  }
}

</mosaic_0001>

<bundles_post_ra>
// kernel: _decode_all.1
= control target key start
LH: loop header
LB: loop body
LE: loop exit
PB: predicated region body
PF: predicated region fallthrough
CT: control target
= control target key end

     0   :  { %7 = vsyncpa [#allocation3], 0  ;;  %s632_s0 = inlined_call_operand.vmem [shape: f32[3,2,5], index: 0, kind: input, shape index: {}]   ;;  %s633_s1 = inlined_call_operand.vmem [shape: f32[3,5,256], index: 1, kind: input, shape index: {}]   ;;  %s634_s2 = inlined_call_operand.hbm [shape: f32[3,2,256], index: 2, kind: output, shape index: {}]  }
   0x1   :  { %9 = vsyncpa [#allocation3 + $0x1], 0  ;;  %s532_s9 = smov 0   ;;  %s534_s10 = smov 0  }
   0x2   :  { %s536_s11 = smov 0   ;;  %s538_s12 = smov 0  }
   0x3   :  { %s540_s13 = smov 0   ;;  %s542_s14 = smov 0  }
   0x4 LB: > { %s362_s15 = sadd.s32 4294967295, %s515_s14   ;;  %s363_s16 = sadd.s32 4294967294, %s515_s14   ;;  %s515_s14 = sphi %s542_s14, %s15_s14   ;;  %s511_s13 = sphi %s540_s13, %s641_s13   ;;  %s507_s12 = sphi %s538_s12, %s640_s12   ;;  %s503_s11 = sphi %s536_s11, %s639_s11   ;;  %s499_s10 = sphi %s534_s10, %s638_s10   ;;  %s495_s9 = sphi %s532_s9, %s637_s9  }
   0x5   : > { %s27_s17 = sadd.s32 1, %s511_s13  ;;  %s90_s18 = sadd.s32 1, %s503_s11 }
   0x6   : > { %p29_p0 = scmp.ge.s32.totalorder %s27_s17, 3  ;;  %p100_p1 = scmp.ne.s32.totalorder %s503_s11, %s499_s10 }
   0x7   : > { %p101_p2 = scmp.eq.s32.totalorder %s362_s15, 2  ;;  %p106_p3 = scmp.ne.s32.totalorder %s499_s10, %s495_s9 }
   0x8   : > { %s643_s17 = smov (%p29_p0, %s27_s17), 0  ;;  %p107_p5 = scmp.eq.s32.totalorder %s363_s16, 2 }
   0x9   : > { %p572_p4 = por %p101_p2, %p100_p1  ;;  %s85_s20 = ssub.s32 %s511_s13, %s643_s17 }
   0xa   : > { %p366_p6 = scmp.ge.s32.totalorder %s515_s14, 1  ;;  %p88_p7 = scmp.eq.s32.totalorder %s85_s20, 0 }
   0xb   : > { %p579_p8 = por %p107_p5, %p106_p3  ;;  %p145_p9 = scmp.lt.s32.totalorder %s515_s14, 4 }
   0xc   : > { %s585_s22 = scalar_select %p88_p7, %s503_s11, %s90_s18  }
   0xd   : > { %p146_p10 = pnand %p366_p6, %p145_p9 }
   0xe   : > { %p175_p11 = scmp.lt.s32.totalorder (!%p146_p10), %s507_s12, 2  ;;  %s172_s4 = sand.u32 (!%p146_p10), 1, %s499_s10  }
   0xf   : > { %149 = sbr.rel (%p146_p10) target bundleno = 162 (0xa2), region = 28  ;;  %s367_s5 = sshll.u32 (!%p146_p10), %s172_s4, 2 }
  0x10   : > { %s381_s6 = sshll.u32 (!%p146_p10), %s507_s12, 2  ;;  %s174_s16 = scalar_lea.vmem (!%p146_p10), [#allocation2], %s367_s5 }
  0x11   : > { %s269_s15 = scalar_lea.hbm (!%p146_p10), %s634_s2, %s381_s6  ;;  %s271_s18 = sshll.u32 (!%p146_p10), %s174_s16, 4  ;;  %s272_s18 = int_to_ptr.vmem [resolvable:$true] %s271_s18 }
  0x12   : > { %s273_s20 = sshll.u32 (!%p146_p10), %s269_s15, 4  ;;  %s457_s27 = scalar_lea.hbm (!%p146_p10), %s634_s2, 12  ;;  %s274_s20 = int_to_ptr.hbm [resolvable:$true] %s273_s20 }
  0x14   : > { %s176_s23 = scalar_select %p175_p11, %s507_s12, 2  ;;  %vm197_vm0 = vcmask 1044480   ;;  %vm193_vm1 = vcmask 39936   ;;  %vm251_vm2 = vcmask 1041408  }
  0x15   : > { %s256_s12 = scalar_lea.sflag [#allocation3], %s172_s4 }
  0x16   : > { %s380_s24 = sshll.u32 %s176_s23, 4  ;;  %s368_s25 = sshll.u32 %s176_s23, 1 }
  0x17   : > { %s187_s28 = scalar_lea.vmem %s633_s1, %s380_s24  ;;  %s178_s3 = scalar_lea.vmem %s632_s0, %s368_s25 }
  0x18   : > { %v192_v0 = vld [vmem:[%s187_s28 + $0x8] sm:$0x1f]  ;;  %v190_v1 = vld [vmem:[%s178_s3] sm:$0x3]  ;;  %s451_s23 = sshra.s32 %s274_s20, 4  ;;  %s452_s23 = int_to_ptr.hbm [resolvable:$true] %s451_s23 }
  0x19   : > { %v191_v2 = vld [vmem:[%s187_s28] sm:$0x1f]  ;;  %373 = vmatpush.msk.msra.mxu1 %vm197_vm0, %v192_v0  ;;  %s453_s24 = scalar_lea.hbm %s452_s23, 4  ;;  %p458_p1 = scmp.lt.s32.totalorder %s452_s23, %s634_s2 }
  0x1a   : > { %371 = vmatpush.msk.msra.mxu0 %vm197_vm0, %v191_v2  ;;  %374 = vmatmul.msk.f32.vlgmr.msra.gmra.mxu1 %vm193_vm1, %v190_v1  ;;  %p454_p12 = scmp.ne.s32.totalorder %s452_s23, %s453_s24  ;;  %p459_p2 = scmp.lt.s32.totalorder %s457_s27, %s453_s24 }
  0x1b   : > { %372 = vmatmul.msk.f32.vlgmr.msra.gmra.mxu0 %vm193_vm1, %v190_v1 }
  0x1c   : > { %p455_p13 = pnand %p454_p12, %p572_p4  ;;  %p460_p3 = por %p459_p2, %p458_p1 }
  0x1e   : > { %p456_p0 = pneg %p455_p13 }
  0x20   : > { %p461_p5 = pnand %p460_p3, %p456_p0 }
  0x97   : > { %v241_v3 = vpop.f32.mrf.mxu1 }
  0x98   : > { %v221_v4 = vpop.f32.mrf.mxu0  ;;  %v245_v5 = vmax.f32 %v241_v3, 0.0 }
  0x99   : > { %v244_v6 = vmax.f32 %v221_v4, 0.0 }
  0x9a   : > { %v247_v7 = vmin.f32 %v245_v5, 1.0 }
  0x9b   : > { %v246_v8 = vmin.f32 %v244_v6, 1.0 }
  0x9c   : > { %v250_v9 = vrot.slane %v247_v7, 6 }
  0x9e   : > { %v252_v10 = vsel %vm251_vm2, %v246_v8, %v250_v9 }
  0x9f   : > { %254 = vst [vmem:[%s174_s16] sm:$0xf] %v252_v10 }
  0xa0   : > { %464 = shalt.err (!%p461_p5)
}
  0xa1   : > { %382 = dma.vmem_to_hbm [thread:$0]  (%p572_p4), %s272_s18, 64, %s274_s20, %s256_s12  }
  0xa2 PF: > { %p388_p6 = scmp.ge.s32.totalorder %s515_s14, 2  ;;  %s285_s30 = sand.u32 1, %s495_s9  }
  0xa3   : > { %s286_s3 = scalar_lea.sflag [#allocation3], %s285_s30 }
  0xa4   : > { %p385_p7 = pnand %p388_p6, %p579_p8 }
  0xa6   : > { %p386_p9 = pneg %p385_p7 }
  0xa8   : > { %490 = dma.done.wait (%p386_p9), %s286_s3, 64  }
  0xa9   : > { %492 = vsyncadd (%p386_p9), %s286_s3, 4294967232  ;;  %s15_s14 = sadd.s32 1, %s515_s14   ;;  %s637_s9 = smov %s499_s10 }
  0xaa   : > { %p12_p10 = scmp.ge.s32.totalorder %s15_s14, 5   ;;  %s638_s10 = smov %s503_s11 }
  0xab   : > { %s639_s11 = smov %s585_s22  ;;  %s640_s12 = smov %s511_s13 }
  0xac   : > { %s641_s13 = smov %s643_s17  ;;  %14 = sbr.rel (!%p12_p10) target bundleno = 4 (0x4), region = 66 }
  0xb1   :  { %292 = vsyncpa [#allocation3], 1 }
  0xb2   :  { %294 = vsyncpa [#allocation3 + $0x1], 1 }

</bundles_post_ra>
